<compile_context>
chip_gen: v5e
topology: v5e:2x2
jax: 0.10.0
libtpu: 0.0.40
codegen_flags: <defaults>
</compile_context>

<pallas_src>
import functools

import jax
import jax.numpy as jnp
from jax.experimental import pallas as pl
from jax.experimental.pallas import tpu as pltpu


_MiB = 1024 * 1024
_SERIAL_TOPK_MAX_K = 16     # serial max-extraction up to here, bit-search beyond

_FALLBACK_ERRORS = (TypeError, ValueError, NotImplementedError)
if hasattr(pltpu, "LoweringException"):
    _FALLBACK_ERRORS = _FALLBACK_ERRORS + (pltpu.LoweringException,)


# ---------------------------------------------------------------------------
# In-kernel top-k helpers (per-row threshold, ties at threshold are all kept)
# ---------------------------------------------------------------------------
def _topk_keep_serial(feats, k):
    """k rounds of max-extraction.  O(k*TB*H) VPU + k XLU row-max reductions."""
    if k <= 0:
        return jnp.zeros_like(feats)
    work = feats
    neg_inf = jnp.float32(-jnp.inf)
    thresh = jnp.max(work, axis=-1, keepdims=True)            # (TB, 1)
    for _ in range(k - 1):
        work = jnp.where(work >= thresh, neg_inf, work)
        thresh = jnp.max(work, axis=-1, keepdims=True)
    # NOTE: if a row has < k positive activations the threshold degrades to
    # 0 / -inf and all entries pass; numerically benign (the extras are 0).
    return jnp.where(feats >= thresh, feats, 0.0)


def _topk_keep_bitsearch(feats, k):
    """Threshold search whose pass count is independent of k.

    feats is post-ReLU (>= 0), so its f32 bit pattern viewed as int32 is
    monotone in value.  Binary-search (31 fixed iterations) the largest bit
    pattern t with count(bits >= t) >= k, i.e. the exact k-th largest value,
    then keep everything >= it.  Ties at the threshold are all kept (same
    policy as the serial path; torch.topk would keep exactly k).
    """
    bits = pltpu.bitcast(feats, jnp.int32)                                  # (TB, H)
    lo = jnp.zeros(feats.shape[:-1] + (1,), jnp.int32)                      # count>=k always
    hi = pltpu.bitcast(jnp.max(feats, axis=-1, keepdims=True), jnp.int32) + 1   # count<k always
    kf = jnp.float32(k)
    for _ in range(31):                                                     # ceil(log2(2^31))
        mid = lo + ((hi - lo) >> 1)
        count = jnp.sum(jnp.where(bits >= mid, 1.0, 0.0), axis=-1, keepdims=True)
        take_lo = count >= kf
        lo = jnp.where(take_lo, mid, lo)
        hi = jnp.where(take_lo, hi, mid)
    return jnp.where(bits >= lo, feats, 0.0)


# ---------------------------------------------------------------------------
# Kernel
# ---------------------------------------------------------------------------
def _sae_kernel(x_ref, wenc_ref, b_ref, wdec_ref, sparse_ref, recon_ref, *,
                k, num_subtiles, subtile_rows):
    bias = b_ref[...]                         # (1, H) f32, hoisted out of the loop
    topk = _topk_keep_serial if k <= _SERIAL_TOPK_MAX_K else _topk_keep_bitsearch

    # Unrolled sub-tile loop, single basic block: the encoder matmul of
    # sub-tile s+1 has no data dependence on the top-k / decoder of sub-tile s,
    # so the scheduler can keep the MXU busy while the VPU/XLU run the top-k.
    for s in range(num_subtiles):
        rows = pl.ds(s * subtile_rows, subtile_rows)
        feats = jnp.dot(x_ref[rows, :], wenc_ref[...],
                        preferred_element_type=jnp.float32)        # MXU, f32 acc
        feats = jnp.maximum(feats + bias, 0.0)                     # VPU, f32
        sparse = topk(feats, k)                                    # VPU/XLU, f32
        sparse_ref[rows, :] = sparse.astype(sparse_ref.dtype)
        recon_ref[rows, :] = jnp.dot(sparse.astype(wdec_ref.dtype), wdec_ref[...],
                                     preferred_element_type=jnp.float32)


# ---------------------------------------------------------------------------
# VMEM sizing / tiling helpers
# ---------------------------------------------------------------------------
def _round_up(x, m):
    return ((x + m - 1) // m) * m


def _vmem_limits():
    """Per-generation per-TensorCore VMEM sizing (v5e/v6e 128 MiB, v7x 64 MiB)."""
    capacity = None
    try:
        info = pltpu.get_tpu_info()
        capacity = getattr(info, "vmem_capacity_bytes", None)
    except Exception:                       # capability query only; safe default below
        capacity = None
    if not capacity or capacity <= 0:
        capacity = 64 * _MiB                # conservative (v7x) default
    limit = max(int(capacity) - 8 * _MiB, 32 * _MiB)    # Mosaic internal-scratch headroom
    budget = min(limit - 8 * _MiB, (limit * 6) // 7)    # working-set budget for tile picking
    return int(limit), int(budget)


def _tile_vmem_bytes(tile, D, H, in_itemsize, sparse_itemsize):
    io = 2 * tile * D * in_itemsize                          # x tile, double-buffered
    io += 2 * (tile * H * sparse_itemsize + tile * D * 4)    # outputs, double-buffered
    tmp = 3 * tile * H * 4 + tile * D * 4                    # feats/work/sparse + recon temps
    return io + tmp


def _pick_batch_tile(B, D, H, in_itemsize, sparse_itemsize, weight_copies, budget):
    weight_bytes = weight_copies * (2 * D * H * in_itemsize + H * 4)
    bp8 = _round_up(max(B, 1), 8)
    cands = {t for t in (1024, 512, 256, 128, 64, 32, 16, 8) if t <= bp8}
    cands.add(min(bp8, 1024))                 # exact padded batch, minimizes pad waste
    feasible = [t for t in cands
                if weight_bytes + _tile_vmem_bytes(t, D, H, in_itemsize,
                                                   sparse_itemsize) <= budget]
    if not feasible:
        # TODO(synk): weights alone exceed the VMEM budget -- stream W_enc^T / W_dec^T
        # from HBM (memory_space=pl.ANY + pltpu.emit_pipeline over H-chunks with a
        # local top-k carried across chunks), or store them as fp8 on v7x.
        return 8
    # Minimize padded-row waste first, then prefer the largest tile (fewer grid
    # steps, better MXU row fill).
    return min(feasible, key=lambda t: (_round_up(B, t) - B, -t))


def _choose_subtiles(batch_tile):
    for n in (4, 2):
        if batch_tile % (8 * n) == 0:
            return n
    return 1


# ---------------------------------------------------------------------------
# pallas_call builder
# ---------------------------------------------------------------------------
def _build_call(D, H, Bp, batch_tile, k, sparse_dtype, in_itemsize, vmem_limit,
                conservative):
    num_subtiles = _choose_subtiles(batch_tile)
    kernel = functools.partial(_sae_kernel, k=k, num_subtiles=num_subtiles,
                               subtile_rows=batch_tile // num_subtiles)

    if conservative:
        # Constant-index-map blocks: correct everywhere; the default pipeliner
        # allocates 2 buffers per operand (tile picker used weight_copies=2).
        def wspec(shape):
            return pl.BlockSpec(shape, lambda i: (0, 0))
        extra = {}
    else:
        # Grid-invariant operands placed whole in VMEM: exactly one copy, never
        # pipelined / double-buffered.
        def wspec(_shape):
            return pl.BlockSpec(memory_space=pltpu.MemorySpace.VMEM)
        sparse_itemsize = jnp.dtype(sparse_dtype).itemsize
        extra = {"cost_estimate": pl.CostEstimate(
            flops=4 * Bp * D * H,                       # encoder + decoder matmuls
            transcendentals=0,
            bytes_accessed=(Bp * D * in_itemsize + 2 * D * H * in_itemsize + H * 4
                            + Bp * H * sparse_itemsize + Bp * D * 4))}

    return pl.pallas_call(
        kernel,
        out_shape=(
            jax.ShapeDtypeStruct((Bp, H), sparse_dtype),
            jax.ShapeDtypeStruct((Bp, D), jnp.float32),
        ),
        grid_spec=pltpu.PrefetchScalarGridSpec(
            num_scalar_prefetch=0,
            grid=(Bp // batch_tile,),
            in_specs=[
                pl.BlockSpec((batch_tile, D), lambda i: (i, 0)),   # x tile (pipelined)
                wspec((D, H)),                                     # W_enc^T (resident)
                wspec((1, H)),                                     # bias    (resident)
                wspec((H, D)),                                     # W_dec^T (resident)
            ],
            out_specs=[
                pl.BlockSpec((batch_tile, H), lambda i: (i, 0)),   # sparse features
                pl.BlockSpec((batch_tile, D), lambda i: (i, 0)),   # reconstruction
            ],
        ),
        compiler_params=pltpu.CompilerParams(
            # megacore: each TC holds its own resident-weight copy.
            dimension_semantics=("parallel",),
            vmem_limit_bytes=vmem_limit,
        ),
        **extra,
    )


# ---------------------------------------------------------------------------
# Public wrappers
# ---------------------------------------------------------------------------
def prepare_sae_params(w_enc, b_enc, w_dec, *, compute_dtype=jnp.bfloat16):
    """One-time parameter prep, hoisted out of the per-step call.

      w_enc: (H, D) -> (D, H) compute_dtype   (pre-transposed, pre-cast)
      w_dec: (D, H) -> (H, D) compute_dtype
      b_enc: (H,)   -> (1, H) float32
    """
    wenc_t = jnp.asarray(w_enc).T.astype(compute_dtype)
    wdec_t = jnp.asarray(w_dec).T.astype(compute_dtype)
    bias = jnp.asarray(b_enc, dtype=jnp.float32).reshape(1, -1)
    return wenc_t, bias, wdec_t


def topk_sae_forward(x, params, k, *, batch_tile=None, sparse_dtype=jnp.float32):
    """TopK SAE forward.  Returns (sparse_features, reconstruction).

    x: (B, D); params: output of prepare_sae_params; k: static Python int.
    sparse_dtype: dtype of the sparse-features output (f32 matches the PyTorch
    module; bf16 halves the dominant HBM write stream on bandwidth-limited v5e).
    """
    wenc_t, bias, wdec_t = params
    B, D = x.shape
    H = wenc_t.shape[1]
    assert wenc_t.shape == (D, H) and wdec_t.shape == (H, D) and bias.shape == (1, H)
    assert D % 128 == 0 and H % 128 == 0, (
        "pad input_dim / hidden_dim to multiples of 128 for lane-dense tiles")
    k = int(k)
    assert 1 <= k <= H, "k must satisfy 1 <= k <= hidden_dim (as torch.topk requires)"

    compute_dtype = wenc_t.dtype
    in_itemsize = jnp.dtype(compute_dtype).itemsize
    sparse_itemsize = jnp.dtype(sparse_dtype).itemsize
    vmem_limit, vmem_budget = _vmem_limits()

    def run(conservative):
        weight_copies = 2 if conservative else 1
        tile = batch_tile
        if tile is None:
            tile = _pick_batch_tile(B, D, H, in_itemsize, sparse_itemsize,
                                    weight_copies, vmem_budget)
        assert tile % 8 == 0, "batch_tile must be a multiple of 8"
        Bp = _round_up(B, tile)
        xb = x.astype(compute_dtype)
        if Bp != B:
            xb = jnp.pad(xb, ((0, Bp - B), (0, 0)))
        call = _build_call(D, H, Bp, tile, k, sparse_dtype, in_itemsize,
                           vmem_limit, conservative)
        sparse, recon = call(xb, wenc_t, bias, wdec_t)
        return sparse[:B], recon[:B]

    try:
        return run(conservative=False)
    except _FALLBACK_ERRORS:
        # Narrow fallback for jax builds that reject whole-array VMEM operands /
        # cost_estimate; genuine failures inside the fallback still surface.
        return run(conservative=True)


# ---------------------------------------------------------------------------
# Pure-JAX reference (mirrors the PyTorch module; same bf16-operand /
# f32-accumulation matmul numerics as the kernel)
# ---------------------------------------------------------------------------
def _reference_forward(x, w_enc, b_enc, w_dec, k, *, compute_dtype=jnp.bfloat16):
    xb = x.astype(compute_dtype)
    we = w_enc.astype(compute_dtype)
    wd = w_dec.astype(compute_dtype)
    feats = jnp.dot(xb, we.T, preferred_element_type=jnp.float32) + b_enc
    feats = jax.nn.relu(feats)
    vals, idx = jax.lax.top_k(feats, k)
    sparse = jax.vmap(
        lambda i, v: jnp.zeros((feats.shape[1],), jnp.float32).at[i].set(v))(idx, vals)
    recon = jnp.dot(sparse.astype(compute_dtype), wd.T,
                    preferred_element_type=jnp.float32)
    return sparse, recon


if __name__ == "__main__":
    def run_case(B, D, H, K, seed=0):
        key = jax.random.PRNGKey(seed)
        kx, kw = jax.random.split(key)
        # Deterministic synthetic init mimicking the module's scheme:
        # decoder weight ~ kaiming-normal, encoder weight = decoder.weight.T, bias = 0.
        w_dec = jax.random.normal(kw, (D, H), dtype=jnp.float32) * (2.0 / D) ** 0.5
        w_enc = w_dec.T                                   # (H, D)
        b_enc = jnp.zeros((H,), dtype=jnp.float32)
        x = jax.random.normal(kx, (B, D), dtype=jnp.float32)

        params = prepare_sae_params(w_enc, b_enc, w_dec)
        sparse, recon = topk_sae_forward(x, params, K)
        jax.block_until_ready((sparse, recon))

        sparse_ref, recon_ref = _reference_forward(x, w_enc, b_enc, w_dec, K)
        assert sparse.shape == (B, H) and recon.shape == (B, D)
        assert jnp.allclose(sparse, sparse_ref, atol=1e-3, rtol=1e-3), \
            f"sparse mismatch (B={B}, k={K})"
        assert jnp.allclose(recon, recon_ref, atol=1e-3, rtol=1e-3), \
            f"recon mismatch (B={B}, k={K})"

    # Small shapes consistent with the module: x is (batch, input_dim).
    run_case(B=8, D=128, H=256, K=4)     # serial top-k path, single sub-tile
    run_case(B=12, D=128, H=256, K=24)   # bit-search top-k, 2 sub-tiles, padded batch

    print("KERNEL_OK")
</pallas_src>

<mosaic_0001>
module attributes {stable_mosaic.version = 11 : i64} {
  func.func @_sae_kernel(%arg0: i32, %arg1: memref<8x128xbf16, #tpu.memory_space<vmem>>, %arg2: memref<128x256xbf16, #tpu.memory_space<vmem>>, %arg3: memref<1x256xf32, #tpu.memory_space<vmem>>, %arg4: memref<256x128xbf16, #tpu.memory_space<vmem>>, %arg5: memref<8x256xf32, #tpu.memory_space<vmem>>, %arg6: memref<8x128xf32, #tpu.memory_space<vmem>>) attributes {dimension_semantics = [#tpu.dimension_semantics<parallel>], iteration_bounds = array<i64: 1>, scalar_prefetch = 0 : i64, scratch_operands = 0 : i64, tpu.core_type = #tpu.core_type<tc>, window_params = [{transform_indices = @transform_0, window_bounds = array<i64: 8, 128>}, {pipeline_mode = #tpu.pipeline_mode<synchronous>, transform_indices = @transform_1, window_bounds = array<i64: 128, 256>}, {pipeline_mode = #tpu.pipeline_mode<synchronous>, transform_indices = @transform_2, window_bounds = array<i64: 1, 256>}, {pipeline_mode = #tpu.pipeline_mode<synchronous>, transform_indices = @transform_3, window_bounds = array<i64: 256, 128>}, {transform_indices = @transform_4, window_bounds = array<i64: 8, 256>}, {transform_indices = @transform_5, window_bounds = array<i64: 8, 128>}]} {
    %c0 = arith.constant 0 : index
    %c0_0 = arith.constant 0 : index
    %0 = vector.load %arg3[%c0, %c0_0] : memref<1x256xf32, #tpu.memory_space<vmem>>, vector<1x256xf32>
    %c0_1 = arith.constant 0 : index
    %c0_2 = arith.constant 0 : index
    %1 = vector.load %arg1[%c0_1, %c0_2] : memref<8x128xbf16, #tpu.memory_space<vmem>>, vector<8x128xbf16>
    %c0_3 = arith.constant 0 : index
    %c0_4 = arith.constant 0 : index
    %2 = vector.load %arg2[%c0_3, %c0_4] : memref<128x256xbf16, #tpu.memory_space<vmem>>, vector<128x256xbf16>
    %cst = arith.constant dense<0.000000e+00> : vector<8x256xf32>
    %3 = tpu.matmul %1, %2, %cst {dimension_numbers = #tpu.dot_dimension_numbers<[1], [0], [0], [1], [0, 0, 1, 1], [], []>} : vector<8x128xbf16>, vector<128x256xbf16>, vector<8x256xf32> -> vector<8x256xf32>
    %4 = vector.broadcast %0 : vector<1x256xf32> to vector<8x256xf32>
    %5 = arith.addf %3, %4 : vector<8x256xf32>
    %cst_5 = arith.constant 0.000000e+00 : f32
    %6 = vector.broadcast %cst_5 : f32 to vector<8x256xf32>
    %7 = arith.maximumf %5, %6 : vector<8x256xf32>
    %cst_6 = arith.constant dense<0xFF800000> : vector<8xf32>
    %8 = vector.multi_reduction <maximumf>, %7, %cst_6 [1] : vector<8x256xf32> to vector<8xf32>
    %9 = vector.shape_cast %8 : vector<8xf32> to vector<8x1xf32>
    %10 = vector.broadcast %9 : vector<8x1xf32> to vector<8x256xf32>
    %11 = arith.cmpf oge, %7, %10 : vector<8x256xf32>
    %cst_7 = arith.constant 0xFF800000 : f32
    %12 = vector.broadcast %cst_7 : f32 to vector<8x256xf32>
    %13 = arith.select %11, %12, %7 : vector<8x256xi1>, vector<8x256xf32>
    %cst_8 = arith.constant dense<0xFF800000> : vector<8xf32>
    %14 = vector.multi_reduction <maximumf>, %13, %cst_8 [1] : vector<8x256xf32> to vector<8xf32>
    %15 = vector.shape_cast %14 : vector<8xf32> to vector<8x1xf32>
    %16 = vector.broadcast %15 : vector<8x1xf32> to vector<8x256xf32>
    %17 = arith.cmpf oge, %13, %16 : vector<8x256xf32>
    %cst_9 = arith.constant 0xFF800000 : f32
    %18 = vector.broadcast %cst_9 : f32 to vector<8x256xf32>
    %19 = arith.select %17, %18, %13 : vector<8x256xi1>, vector<8x256xf32>
    %cst_10 = arith.constant dense<0xFF800000> : vector<8xf32>
    %20 = vector.multi_reduction <maximumf>, %19, %cst_10 [1] : vector<8x256xf32> to vector<8xf32>
    %21 = vector.shape_cast %20 : vector<8xf32> to vector<8x1xf32>
    %22 = vector.broadcast %21 : vector<8x1xf32> to vector<8x256xf32>
    %23 = arith.cmpf oge, %19, %22 : vector<8x256xf32>
    %cst_11 = arith.constant 0xFF800000 : f32
    %24 = vector.broadcast %cst_11 : f32 to vector<8x256xf32>
    %25 = arith.select %23, %24, %19 : vector<8x256xi1>, vector<8x256xf32>
    %cst_12 = arith.constant dense<0xFF800000> : vector<8xf32>
    %26 = vector.multi_reduction <maximumf>, %25, %cst_12 [1] : vector<8x256xf32> to vector<8xf32>
    %27 = vector.shape_cast %26 : vector<8xf32> to vector<8x1xf32>
    %28 = vector.broadcast %27 : vector<8x1xf32> to vector<8x256xf32>
    %29 = arith.cmpf oge, %7, %28 : vector<8x256xf32>
    %cst_13 = arith.constant 0.000000e+00 : f32
    %30 = vector.broadcast %cst_13 : f32 to vector<8x256xf32>
    %31 = arith.select %29, %7, %30 : vector<8x256xi1>, vector<8x256xf32>
    %c0_14 = arith.constant 0 : index
    %c0_15 = arith.constant 0 : index
    %32 = vector.load %arg5[%c0_14, %c0_15] : memref<8x256xf32, #tpu.memory_space<vmem>>, vector<8x256xf32>
    tpu.vector_store %arg5[%c0_14, %c0_15], %31 {strides = array<i32>} : memref<8x256xf32, #tpu.memory_space<vmem>>, vector<8x256xf32>,
    %33 = arith.truncf %31 : vector<8x256xf32> to vector<8x256xbf16>
    %c0_16 = arith.constant 0 : index
    %c0_17 = arith.constant 0 : index
    %34 = vector.load %arg4[%c0_16, %c0_17] : memref<256x128xbf16, #tpu.memory_space<vmem>>, vector<256x128xbf16>
    %cst_18 = arith.constant dense<0.000000e+00> : vector<8x128xf32>
    %35 = tpu.matmul %33, %34, %cst_18 {dimension_numbers = #tpu.dot_dimension_numbers<[1], [0], [0], [1], [0, 0, 1, 1], [], []>} : vector<8x256xbf16>, vector<256x128xbf16>, vector<8x128xf32> -> vector<8x128xf32>
    %c0_19 = arith.constant 0 : index
    %c0_20 = arith.constant 0 : index
    %36 = vector.load %arg6[%c0_19, %c0_20] : memref<8x128xf32, #tpu.memory_space<vmem>>, vector<8x128xf32>
    tpu.vector_store %arg6[%c0_19, %c0_20], %35 {strides = array<i32>} : memref<8x128xf32, #tpu.memory_space<vmem>>, vector<8x128xf32>,
    return
  }
  func.func @transform_0(%arg0: i32) -> (i32, i32) {
    %c0_i32 = arith.constant 0 : i32
    %c0_i32_0 = arith.constant 0 : i32
    return %arg0, %c0_i32 : i32, i32
  }
  func.func @transform_1(%arg0: i32) -> (i32, i32) {
    %c0_i32 = arith.constant 0 : i32
    %c0_i32_0 = arith.constant 0 : i32
    %c0_i32_1 = arith.constant 0 : i32
    return %c0_i32, %c0_i32_0 : i32, i32
  }
  func.func @transform_2(%arg0: i32) -> (i32, i32) {
    %c0_i32 = arith.constant 0 : i32
    %c0_i32_0 = arith.constant 0 : i32
    %c0_i32_1 = arith.constant 0 : i32
    return %c0_i32, %c0_i32_0 : i32, i32
  }
  func.func @transform_3(%arg0: i32) -> (i32, i32) {
    %c0_i32 = arith.constant 0 : i32
    %c0_i32_0 = arith.constant 0 : i32
    %c0_i32_1 = arith.constant 0 : i32
    return %c0_i32, %c0_i32_0 : i32, i32
  }
  func.func @transform_4(%arg0: i32) -> (i32, i32) {
    %c0_i32 = arith.constant 0 : i32
    %c0_i32_0 = arith.constant 0 : i32
    return %arg0, %c0_i32 : i32, i32
  }
  func.func @transform_5(%arg0: i32) -> (i32, i32) {
    %c0_i32 = arith.constant 0 : i32
    %c0_i32_0 = arith.constant 0 : i32
    return %arg0, %c0_i32 : i32, i32
  }
}

</mosaic_0001>

<bundles_post_ra>
// kernel: tpu_custom_call.1
= control target key start
LH: loop header
LB: loop body
LE: loop exit
PB: predicated region body
PF: predicated region fallthrough
CT: control target
= control target key end

     0   :  { %11 = vsyncpa [#allocation3], 0  ;;  %s839_s0 = inlined_call_operand.hbm [shape: bf16[8,128], index: 0, kind: input, shape index: {}]   ;;  %s840_s1 = inlined_call_operand.hbm [shape: bf16[128,256], index: 1, kind: input, shape index: {}]   ;;  %s841_s2 = inlined_call_operand.hbm [shape: f32[1,256], index: 2, kind: input, shape index: {}]   ;;  %s842_s3 = inlined_call_operand.hbm [shape: bf16[256,128], index: 3, kind: input, shape index: {}]   ;;  %s843_s4 = inlined_call_operand.hbm [shape: f32[8,256], index: 4, kind: output, shape index: {0}]   ;;  %s844_s5 = inlined_call_operand.hbm [shape: f32[8,128], index: 5, kind: output, shape index: {1}]  }
   0x1   :  { %12 = vsyncpa [#allocation6], 0 }
   0x2   :  { %13 = vsyncpa [#allocation9], 0 }
   0x3   :  { %14 = vsyncpa [#allocation4], 0  ;;  %s31_s20 = sshll.u32 %s840_s1, 4  ;;  %s32_s20 = int_to_ptr.hbm [resolvable:$true] %s31_s20 }
   0x4   :  { %15 = vsyncpa [#allocation12], 0  ;;  %s763_s21 = smov [#allocation5]   ;;  %s21_s25 = sshll.u32 %s839_s0, 4  ;;  %s22_s25 = int_to_ptr.hbm [resolvable:$true] %s21_s25 }
   0x5   :  { %s33_s22 = sshll.u32 %s763_s21, 4  ;;  %s764_s26 = smov 128   ;;  %s34_s22 = int_to_ptr.vmem [resolvable:$true] %s33_s22 }
   0x6   :  { %s765_s27 = smov 8   ;;  %s766_s28 = smov [#allocation2]  }
   0x7   :  { %39 = dma.hbm_to_vmem [thread:$0]  %s32_s20, 2048, %s34_s22, [#allocation6], %s764_s26, %s764_s26, %s765_s27  }
   0x8   :  { %s23_s29 = sshll.u32 %s766_s28, 4  ;;  %s45_s7 = sshll.u32 %s841_s2, 4  ;;  %s24_s29 = int_to_ptr.vmem [resolvable:$true] %s23_s29  ;;  %s46_s7 = int_to_ptr.hbm [resolvable:$true] %s45_s7 }
   0x9   :  { %26 = dma.hbm_to_vmem [thread:$0]  %s22_s25, 64, %s24_s29, [#allocation3]  }
   0xa   :  { %s55_s9 = sshll.u32 %s842_s3, 4  ;;  %s767_s10 = smov [#allocation7]   ;;  %s56_s9 = int_to_ptr.hbm [resolvable:$true] %s55_s9 }
   0xb   :  { %s47_s11 = sshll.u32 %s767_s10, 4  ;;  %s768_s0 = smov [#allocation8]   ;;  %s48_s11 = int_to_ptr.vmem [resolvable:$true] %s47_s11 }
   0xc   :  { %50 = dma.hbm_to_vmem [thread:$0]  %s46_s7, 32, %s48_s11, [#allocation6]  }
   0xd   :  { %s57_s12 = sshll.u32 %s768_s0, 4  ;;  %s769_s13 = smov 64   ;;  %s58_s12 = int_to_ptr.vmem [resolvable:$true] %s57_s12 }
   0xe   :  { %s770_s14 = smov 4  }
   0xf   :  { %63 = dma.hbm_to_vmem [thread:$0]  %s56_s9, 2048, %s58_s12, [#allocation9], %s769_s13, %s769_s13, %s770_s14  }
  0x10   :  { %753 = dma.done.wait [#allocation3], 64  }
  0x11   :  { %754 = vsyncadd [#allocation3], 4294967232 }
  0x12   :  { %755 = dma.done.wait [#allocation6], 2080  }
  0x13   :  { %756 = vsyncadd [#allocation6], 4294965216 }
  0x14   :  { %757 = dma.done.wait [#allocation9], 2048  }
  0x15   :  { %758 = vsyncadd [#allocation9], 4294965248  ;;  %v491_v0 = vld [vmem:[#allocation5 + $0x70] sm:$0xf]  ;;  %v582_v1 = vld [vmem:[#allocation5 + $0x74] sm:$0xf0] }
  0x16   :  { %v581_v2 = vld [vmem:[#allocation5 + $0x74] sm:$0xf]  ;;  %v492_v3 = vor.u32 %v582_v1, %v491_v0  ;;  %v493_v4 = vld [vmem:[#allocation5 + $0x78] sm:$0xf0]  ;;  %v483_v5 = vld [vmem:[#allocation5 + $0x60] sm:$0xf] }
  0x17   :  { %v580_v6 = vld [vmem:[#allocation5 + $0x64] sm:$0xf0]  ;;  %v496_v7 = vor.u32 %v581_v2, %v493_v4  ;;  %v579_v8 = vld [vmem:[#allocation5 + $0x64] sm:$0xf]  ;;  %v485_v9 = vld [vmem:[#allocation5 + $0x68] sm:$0xf0] }
  0x18   :  { %183 = vmatpush.bf16.msra.mxu0 %v492_v3  ;;  %v484_v10 = vor.u32 %v580_v6, %v483_v5  ;;  %v488_v11 = vor.u32 %v579_v8, %v485_v9  ;;  %v475_v12 = vld [vmem:[#allocation5 + $0x50] sm:$0xf]  ;;  %v578_v13 = vld [vmem:[#allocation5 + $0x54] sm:$0xf0]  ;;  %v577_v14 = vld [vmem:[#allocation5 + $0x54] sm:$0xf] }
  0x19   :  { %196 = vmatpush.bf16.msra.mxu1 %v496_v7  ;;  %v477_v15 = vld [vmem:[#allocation5 + $0x58] sm:$0xf0]  ;;  %v476_v16 = vor.u32 %v578_v13, %v475_v12  ;;  %v467_v18 = vld [vmem:[#allocation5 + $0x40] sm:$0xf]  ;;  %v576_v19 = vld [vmem:[#allocation5 + $0x44] sm:$0xf0] }
  0x1a   :  { %v480_v17 = vor.u32 %v577_v14, %v477_v15  ;;  %v575_v20 = vld [vmem:[#allocation5 + $0x44] sm:$0xf]  ;;  %v469_v21 = vld [vmem:[#allocation5 + $0x48] sm:$0xf0]  ;;  %v468_v22 = vor.u32 %v576_v19, %v467_v18  ;;  %v459_v24 = vld [vmem:[#allocation5 + $0x30] sm:$0xf] }
  0x1b   :  { %v472_v23 = vor.u32 %v575_v20, %v469_v21  ;;  %v574_v25 = vld [vmem:[#allocation5 + $0x34] sm:$0xf0]  ;;  %v573_v26 = vld [vmem:[#allocation5 + $0x34] sm:$0xf]  ;;  %v461_v27 = vld [vmem:[#allocation5 + $0x38] sm:$0xf0] }
  0x1c   :  { %184 = vmatpush.bf16.msra.mxu0 %v484_v10  ;;  %v460_v28 = vor.u32 %v574_v25, %v459_v24  ;;  %v464_v29 = vor.u32 %v573_v26, %v461_v27  ;;  %v451_v30 = vld [vmem:[#allocation5 + $0x20] sm:$0xf]  ;;  %v572_v31 = vld [vmem:[#allocation5 + $0x24] sm:$0xf0]  ;;  %v571_v32 = vld [vmem:[#allocation5 + $0x24] sm:$0xf] }
  0x1d   :  { %197 = vmatpush.bf16.msra.mxu1 %v488_v11  ;;  %v453_v33 = vld [vmem:[#allocation5 + $0x28] sm:$0xf0]  ;;  %v452_v34 = vor.u32 %v572_v31, %v451_v30  ;;  %v443_v36 = vld [vmem:[#allocation5 + $0x10] sm:$0xf]  ;;  %v570_v37 = vld [vmem:[#allocation5 + $0x14] sm:$0xf0] }
  0x1e   :  { %v456_v35 = vor.u32 %v571_v32, %v453_v33  ;;  %v569_v38 = vld [vmem:[#allocation5 + $0x14] sm:$0xf]  ;;  %v445_v39 = vld [vmem:[#allocation5 + $0x18] sm:$0xf0]  ;;  %v444_v40 = vor.u32 %v570_v37, %v443_v36  ;;  %v435_v42 = vld [vmem:[#allocation5] sm:$0xf] }
  0x1f   :  { %v448_v41 = vor.u32 %v569_v38, %v445_v39  ;;  %v568_v43 = vld [vmem:[#allocation5 + $0x4] sm:$0xf0]  ;;  %v567_v44 = vld [vmem:[#allocation5 + $0x4] sm:$0xf]  ;;  %v437_v45 = vld [vmem:[#allocation5 + $0x8] sm:$0xf0] }
  0x20   :  { %185 = vmatpush.bf16.msra.mxu0 %v476_v16  ;;  %v436_v46 = vor.u32 %v568_v43, %v435_v42  ;;  %v440_v47 = vor.u32 %v567_v44, %v437_v45  ;;  %v81_v48 = vld [vmem:[#allocation2] sm:$0xf]  ;;  %v80_v49 = vld [vmem:[#allocation7] sm:$0x3]  ;;  %v589_v7 = vld [vmem:[#allocation8 + $0x30] sm:$0xff]  ;;  %s771_s2 = smov [#allocation10]  }
  0x21   :  { %198 = vmatpush.bf16.msra.mxu1 %v480_v17  ;;  %v99_v50 = vperm.slane %v80_v49, 0  ;;  %v100_v51 = vperm.slane %v80_v49, 1  ;;  %v590_v5 = vld [vmem:[#allocation8 + $0x38] sm:$0xff]  ;;  %v597_v8 = vld [vmem:[#allocation8 + $0x70] sm:$0xff]  ;;  %v588_v9 = vld [vmem:[#allocation8 + $0x28] sm:$0xff]  ;;  %s403_s3 = sshll.u32 %s771_s2, 4  ;;  %s404_s3 = int_to_ptr.vmem [resolvable:$true] %s403_s3 }
  0x22   :  { %v598_v6 = vld [vmem:[#allocation8 + $0x78] sm:$0xff]  ;;  %371 = vmatpush.bf16.msra.mxu2 %v590_v5  ;;  %v596_v10 = vld [vmem:[#allocation8 + $0x68] sm:$0xff]  ;;  %v587_v11 = vld [vmem:[#allocation8 + $0x20] sm:$0xff]  ;;  %s405_s17 = sshll.u32 %s843_s4, 4  ;;  %s772_s18 = smov [#allocation11]   ;;  %s406_s17 = int_to_ptr.hbm [resolvable:$true] %s405_s17 }
  0x23   :  { %384 = vmatpush.bf16.msra.mxu3 %v598_v6  ;;  %v595_v12 = vld [vmem:[#allocation8 + $0x60] sm:$0xff]  ;;  %v586_v13 = vld [vmem:[#allocation8 + $0x18] sm:$0xff]  ;;  %v585_v15 = vld [vmem:[#allocation8 + $0x10] sm:$0xff]  ;;  %s414_s19 = sshll.u32 %s772_s18, 4  ;;  %s416_s22 = sshll.u32 %s844_s5, 4  ;;  %s415_s19 = int_to_ptr.vmem [resolvable:$true] %s414_s19  ;;  %s417_s22 = int_to_ptr.hbm [resolvable:$true] %s416_s22 }
  0x24   :  { %186 = vmatpush.bf16.msra.mxu0 %v468_v22  ;;  %v594_v14 = vld [vmem:[#allocation8 + $0x58] sm:$0xff]  ;;  %v593_v16 = vld [vmem:[#allocation8 + $0x50] sm:$0xff]  ;;  %v584_v17 = vld [vmem:[#allocation8 + $0x8] sm:$0xff] }
  0x25   :  { %199 = vmatpush.bf16.msra.mxu1 %v472_v23  ;;  %v592_v18 = vld [vmem:[#allocation8 + $0x48] sm:$0xff]  ;;  %v583_v19 = vld [vmem:[#allocation8] sm:$0xff] }
  0x26   :  { %372 = vmatpush.bf16.msra.mxu2 %v589_v7  ;;  %v591_v20 = vld [vmem:[#allocation8 + $0x40] sm:$0xff] }
  0x27   :  { %385 = vmatpush.bf16.msra.mxu3 %v597_v8 }
  0x28   :  { %187 = vmatpush.bf16.msra.mxu0 %v460_v28 }
  0x29   :  { %200 = vmatpush.bf16.msra.mxu1 %v464_v29 }
  0x2a   :  { %373 = vmatpush.bf16.msra.mxu2 %v588_v9 }
  0x2b   :  { %386 = vmatpush.bf16.msra.mxu3 %v596_v10 }
  0x2c   :  { %188 = vmatpush.bf16.msra.mxu0 %v452_v34 }
  0x2d   :  { %201 = vmatpush.bf16.msra.mxu1 %v456_v35 }
  0x2e   :  { %374 = vmatpush.bf16.msra.mxu2 %v587_v11 }
  0x2f   :  { %387 = vmatpush.bf16.msra.mxu3 %v595_v12 }
  0x30   :  { %189 = vmatpush.bf16.msra.mxu0 %v444_v40 }
  0x31   :  { %202 = vmatpush.bf16.msra.mxu1 %v448_v41 }
  0x32   :  { %375 = vmatpush.bf16.msra.mxu2 %v586_v13 }
  0x33   :  { %388 = vmatpush.bf16.msra.mxu3 %v594_v14 }
  0x34   :  { %190 = vmatpush.bf16.msra.mxu0 %v436_v46 }
  0x35   :  { %203 = vmatpush.bf16.msra.mxu1 %v440_v47 }
  0x36   :  { %376 = vmatpush.bf16.msra.mxu2 %v585_v15 }
  0x37   :  { %191 = vmatmul.bf16.vlgmr.msra.gmra.mxu0 %v81_v48  ;;  %389 = vmatpush.bf16.msra.mxu3 %v593_v16 }
  0x38   :  { %204 = vmatmul.bf16.vlgmr.msra.gmra.mxu1 %v81_v48 }
  0x3a   :  { %377 = vmatpush.bf16.msra.mxu2 %v584_v17 }
  0x3b   :  { %390 = vmatpush.bf16.msra.mxu3 %v592_v18 }
  0x3e   :  { %378 = vmatpush.bf16.msra.mxu2 %v583_v19 }
  0x3f   :  { %391 = vmatpush.bf16.msra.mxu3 %v591_v20 }
  0xb4   :  { %v192_v52 = vpop.f32.mrf.mxu0 }
  0xb5   :  { %v193_v53 = vadd.f32 %v192_v52, %v99_v50  ;;  %v205_v54 = vpop.f32.mrf.mxu1 }
  0xb6   :  { %v206_v55 = vadd.f32 %v205_v54, %v100_v51 }
  0xb7   :  { %v815_v56 = vmax.f32 %v193_v53, 0.0 }
  0xb8   :  { %v817_v57 = vmax.f32 %v206_v55, 0.0 }
  0xb9   :  { %v562_v26 = vpack.c.bf16 %v815_v56, %v815_v56 }
  0xba   :  { %v211_v58 = vmax.f32 %v815_v56, %v817_v57  ;;  %v565_v29 = vpack.c.bf16 %v817_v57, %v817_v57 }
  0xbc   :  { %212 = vmax.xlane.f32.xlu0 %v211_v58  ;;  %v194_v59 = vpop.f32.mrf.mxu0 }
  0xbd   :  { %v207_v60 = vpop.f32.mrf.mxu1 }
 0x12f   :  { %v213_v61 = vpop.xlane.xlu0 %212 }
 0x130   :  { %vm214_vm0 = vcmp.ge.f32.partialorder %v815_v56, %v213_v61  ;;  %vm215_vm1 = vcmp.ge.f32.partialorder %v817_v57, %v213_v61 }
 0x131   :  { %v216_v62 = vsel %vm214_vm0, -inf, %v815_v56  ;;  %v217_v63 = vsel %vm215_vm1, -inf, %v817_v57 }
 0x132   :  { %v218_v0 = vmax.f32 %v216_v62, %v217_v63 }
 0x134   :  { %219 = vmax.xlane.f32.xlu0 %v218_v0 }
 0x1a7   :  { %v220_v1 = vpop.xlane.xlu0 %219 }
 0x1a8   :  { %vm221_vm2 = vcmp.ge.f32.partialorder %v216_v62, %v220_v1  ;;  %vm222_vm3 = vcmp.ge.f32.partialorder %v217_v63, %v220_v1 }
 0x1a9   :  { %v223_v2 = vsel %vm221_vm2, -inf, %v216_v62  ;;  %v224_v3 = vsel %vm222_vm3, -inf, %v217_v63 }
 0x1aa   :  { %v225_v4 = vmax.f32 %v223_v2, %v224_v3 }
 0x1ac   :  { %226 = vmax.xlane.f32.xlu1 %v225_v4 }
 0x21f   :  { %v227_v21 = vpop.xlane.xlu1 %226 }
 0x220   :  { %vm228_vm4 = vcmp.ge.f32.partialorder %v223_v2, %v227_v21  ;;  %vm229_vm5 = vcmp.ge.f32.partialorder %v224_v3, %v227_v21 }
 0x221   :  { %v230_v22 = vsel %vm228_vm4, -inf, %v223_v2  ;;  %v231_v23 = vsel %vm229_vm5, -inf, %v224_v3 }
 0x222   :  { %v232_v24 = vmax.f32 %v230_v22, %v231_v23 }
 0x224   :  { %233 = vmax.xlane.f32.xlu1 %v232_v24 }
 0x297   :  { %v234_v25 = vpop.xlane.xlu1 %233 }
 0x298   :  { %vm235_vm6 = vcmp.ge.f32.partialorder %v815_v56, %v234_v25  ;;  %vm236_vm7 = vcmp.ge.f32.partialorder %v817_v57, %v234_v25 }
 0x299   :  { %v237_v27 = vsel %vm235_vm6, %v815_v56, 0.0  ;;  %v238_v28 = vsel %vm236_vm7, %v817_v57, 0.0  ;;  %vm561_vm8 = vmpackc.low %vm235_vm6, %vm235_vm6 }
 0x29a   :  { %239 = vst [vmem:[#allocation10] sm:$0xff] %v237_v27  ;;  %vm564_vm9 = vmpackc.low %vm236_vm7, %vm236_vm7  ;;  %563 = vmatmul.msk.bf16.vlgmr.msra.gmra.mxu2 %vm561_vm8, %v562_v26 }
 0x29b   :  { %240 = vst [vmem:[#allocation10 + $0x8] sm:$0xff] %v238_v28  ;;  %566 = vmatmul.msk.bf16.vlgmr.msra.gmra.mxu3 %vm564_vm9, %v565_v29 }
 0x29c   :  { %408 = dma.vmem_to_hbm [thread:$0]  %s404_s3, 256, %s406_s17, [#allocation4]  }
 0x31d   :  { %v380_v30 = vpop.f32.mrf.mxu2 }
 0x31e   :  { %v393_v31 = vpop.f32.mrf.mxu3 }
 0x31f   :  { %v394_v32 = vadd.f32 %v393_v31, %v380_v30 }
 0x321   :  { %397 = vst [vmem:[#allocation11] sm:$0xff] %v394_v32 }
 0x322   :  { %419 = dma.vmem_to_hbm [thread:$0]  %s415_s19, 128, %s417_s22, [#allocation12]  }
 0x325   :  { %v382_v33 = vpop.f32.mrf.mxu2 }
 0x326   :  { %v395_v34 = vpop.f32.mrf.mxu3 }
 0x327   :  { %759 = dma.done.wait [#allocation4], 256  }
 0x328   :  { %760 = vsyncadd [#allocation4], 4294967040 }
 0x329   :  { %761 = dma.done.wait [#allocation12], 128  }
 0x32a   :  { %762 = vsyncadd [#allocation12], 4294967168 }
 0x32b   :  { %428 = vsyncpa [#allocation3], 1 }
 0x32c   :  { %429 = vsyncpa [#allocation6], 1 }
 0x32d   :  { %430 = vsyncpa [#allocation9], 1 }
 0x32e   :  { %431 = vsyncpa [#allocation4], 1 }
 0x32f   :  { %432 = vsyncpa [#allocation12], 1 }

</bundles_post_ra>
